<compile_context>
chip_gen: v5e
topology: v5e:2x2
jax: 0.10.0
libtpu: 0.0.40
codegen_flags: <defaults>
</compile_context>

<pallas_src>
import math

import jax
import jax.numpy as jnp
from jax import lax
from jax.experimental import pallas as pl
from jax.experimental.pallas import tpu as pltpu


# ---------------------------------------------------------------------------
# Block-size helpers (prefer >= 2 grid steps: v7x has 2 TensorCores)
# ---------------------------------------------------------------------------
def _row_block(n, cap=1024):
    """Row block for (rows, feature) kernels: multiple of 8 dividing n,
    capped, and leaving >= 2 grid steps whenever possible."""
    if n <= 8 or n % 8 != 0:
        return n
    target = min(cap, max(8, n // 2))
    cand = (target // 8) * 8
    while cand >= 8:
        if n % cand == 0:
            return cand
        cand -= 8
    return n


def _batch_block(b, q_len):
    """Batch block for the attention kernel: divisor of b giving >= 2 grid
    steps, capped so a step holds ~512 query rows."""
    if b <= 1:
        return 1
    cap = max(1, 512 // max(q_len, 1))
    best = 1
    for cand in range(1, b // 2 + 1):
        if b % cand == 0 and cand <= cap:
            best = cand
    return best


def _kv_block(lk, cap=512):
    """KV-sequence block (flash K axis): full if small, else a multiple of 8
    dividing lk."""
    if lk <= cap:
        return lk
    cand = (cap // 8) * 8
    while cand >= 8:
        if lk % cand == 0:
            return cand
        cand -= 8
    return lk


# ---------------------------------------------------------------------------
# Kernels
# ---------------------------------------------------------------------------
def _qkv_proj_kernel(x_ref, w_ref, q_ref, kv_ref):
    """Fused QKV projection: y = x @ [Wq;Wk;Wv]^T (pre-transposed weight),
    split into q:(rb,d) and kv:(rb,2d) outputs.  One HBM read of x."""
    y = jnp.dot(x_ref[...], w_ref[...], preferred_element_type=jnp.float32)
    d = q_ref.shape[-1]
    q_ref[...] = y[:, :d].astype(q_ref.dtype)
    kv_ref[...] = y[:, d:].astype(kv_ref.dtype)


def _matmul_kernel(x_ref, w_ref, o_ref):
    """o = x @ W (weight already transposed to (Din, Dout); bias-free)."""
    o_ref[...] = jnp.dot(x_ref[...], w_ref[...],
                         preferred_element_type=jnp.float32).astype(o_ref.dtype)


def _ffn_addnorm_kernel(z_ref, w1_ref, b1_ref, w2_ref, b2_ref,
                        g_ref, beta_ref, o_ref):
    """o = LayerNorm(z + (relu(z @ W1 + b1) @ W2 + b2)); z read once."""
    z = z_ref[...]
    h = jnp.dot(z, w1_ref[...], preferred_element_type=jnp.float32) + b1_ref[...]
    h = jnp.maximum(h, 0.0).astype(z.dtype)
    y = jnp.dot(h, w2_ref[...], preferred_element_type=jnp.float32) + b2_ref[...]
    s = y + z.astype(jnp.float32)
    mean = jnp.mean(s, axis=-1, keepdims=True)
    c = s - mean
    var = jnp.mean(c * c, axis=-1, keepdims=True)
    o_ref[...] = (c * lax.rsqrt(var + 1e-5) * g_ref[...] + beta_ref[...]
                  ).astype(o_ref.dtype)


def _make_attn_kernel(num_heads, head_dim, masked):
    """Fused multi-head attention block:
         flash-style online softmax over the K grid axis (per-head m/l/acc in
         VMEM scratch), then at the last K step: merge heads, apply W_o,
         residual add and LayerNorm, writing a lane-dense (Bb, Q, d) block.

    q_ref : (Bb, Q, d)       kv_ref : (Bb, Kb, 2d)   (k in [:d], v in [d:])
    x_ref : (Bb, Q, d) residual      wo_ref : (d, d) pre-transposed
    g/beta: (1, d)            vl_ref : (Bb, Q, 1) int32 (masked variant only)
    scratch: m/l (H, Bb, Q, 1) f32, acc (H, Bb, Q, Dh) f32
    The 1/sqrt(Dh) scale is folded into W_q at prepare time.
    """
    d = num_heads * head_dim

    def _body(q_ref, kv_ref, x_ref, wo_ref, g_ref, beta_ref, vl_ref,
              o_ref, m_scr, l_scr, acc_scr):
        kk = pl.program_id(1)
        nk = pl.num_programs(1)

        @pl.when(kk == 0)
        def _init():
            m_scr[...] = jnp.full(m_scr.shape, -jnp.inf, jnp.float32)
            l_scr[...] = jnp.zeros(l_scr.shape, jnp.float32)
            acc_scr[...] = jnp.zeros(acc_scr.shape, jnp.float32)

        q = q_ref[...]                      # (Bb, Q, d)
        kv = kv_ref[...]                    # (Bb, Kb, 2d)
        kb = kv.shape[1]

        if masked:
            vl = vl_ref[...]                # (Bb, Q, 1) int32
            col = kk * kb + lax.broadcasted_iota(
                jnp.int32, (q.shape[0], q.shape[1], kb), 2)
            keep = col < vl                 # shared across heads

        for h in range(num_heads):
            lo = h * head_dim
            qh = q[:, :, lo:lo + head_dim]
            kh = kv[:, :, lo:lo + head_dim]
            vh = kv[:, :, d + lo:d + lo + head_dim]
            s = jnp.einsum("bqd,bkd->bqk", qh, kh,
                           preferred_element_type=jnp.float32)
            if masked:
                s = jnp.where(keep, s, -1e6)    # sequence_mask value
            m_prev = m_scr[h]
            m_new = jnp.maximum(m_prev, jnp.max(s, axis=-1, keepdims=True))
            alpha = jnp.exp(m_prev - m_new)
            p = jnp.exp(s - m_new)
            l_scr[h] = alpha * l_scr[h] + jnp.sum(p, axis=-1, keepdims=True)
            acc_scr[h] = alpha * acc_scr[h] + jnp.einsum(
                "bqk,bkd->bqd", p.astype(vh.dtype), vh,
                preferred_element_type=jnp.float32)
            m_scr[h] = m_new

        @pl.when(kk == nk - 1)
        def _finalize():
            heads = [acc_scr[h] / l_scr[h] for h in range(num_heads)]
            attn = jnp.concatenate(heads, axis=-1).astype(q_ref.dtype)
            bb, qq, _ = attn.shape
            proj = jnp.dot(attn.reshape(bb * qq, d), wo_ref[...],
                           preferred_element_type=jnp.float32).reshape(bb, qq, d)
            s2 = proj + x_ref[...].astype(jnp.float32)
            mean = jnp.mean(s2, axis=-1, keepdims=True)
            c = s2 - mean
            var = jnp.mean(c * c, axis=-1, keepdims=True)
            o_ref[...] = (c * lax.rsqrt(var + 1e-5) * g_ref[...] +
                          beta_ref[...]).astype(o_ref.dtype)

    if masked:
        def kernel(q_ref, kv_ref, x_ref, wo_ref, g_ref, beta_ref, vl_ref,
                   o_ref, m_scr, l_scr, acc_scr):
            _body(q_ref, kv_ref, x_ref, wo_ref, g_ref, beta_ref, vl_ref,
                  o_ref, m_scr, l_scr, acc_scr)
    else:
        def kernel(q_ref, kv_ref, x_ref, wo_ref, g_ref, beta_ref,
                   o_ref, m_scr, l_scr, acc_scr):
            _body(q_ref, kv_ref, x_ref, wo_ref, g_ref, beta_ref, None,
                  o_ref, m_scr, l_scr, acc_scr)
    return kernel


# ---------------------------------------------------------------------------
# pallas_call wrappers
# ---------------------------------------------------------------------------
def qkv_projection(x, wqkv_t, d):
    """x: (..., d) -> q: (..., d), kv: (..., 2d) with one matmul call."""
    lead = x.shape[:-1]
    din = x.shape[-1]
    x2 = x.reshape(-1, din)
    n = x2.shape[0]
    rb = _row_block(n)
    q, kv = pl.pallas_call(
        _qkv_proj_kernel,
        out_shape=(jax.ShapeDtypeStruct((n, d), x.dtype),
                   jax.ShapeDtypeStruct((n, 2 * d), x.dtype)),
        grid_spec=pltpu.PrefetchScalarGridSpec(
            num_scalar_prefetch=0,
            grid=(n // rb,),
            in_specs=[pl.BlockSpec((rb, din), lambda r: (r, 0)),
                      pl.BlockSpec((din, 3 * d), lambda r: (0, 0))],
            out_specs=[pl.BlockSpec((rb, d), lambda r: (r, 0)),
                       pl.BlockSpec((rb, 2 * d), lambda r: (r, 0))]),
        compiler_params=pltpu.CompilerParams(
            dimension_semantics=("parallel",)),
    )(x2, wqkv_t)
    return q.reshape(lead + (d,)), kv.reshape(lead + (2 * d,))


def matmul(x, w_t):
    """x: (..., Din) @ w_t: (Din, Dout), bias-free (MHA projections)."""
    lead = x.shape[:-1]
    din = x.shape[-1]
    dout = w_t.shape[1]
    x2 = x.reshape(-1, din)
    n = x2.shape[0]
    rb = _row_block(n)
    y = pl.pallas_call(
        _matmul_kernel,
        out_shape=jax.ShapeDtypeStruct((n, dout), x.dtype),
        grid_spec=pltpu.PrefetchScalarGridSpec(
            num_scalar_prefetch=0,
            grid=(n // rb,),
            in_specs=[pl.BlockSpec((rb, din), lambda r: (r, 0)),
                      pl.BlockSpec((din, dout), lambda r: (0, 0))],
            out_specs=pl.BlockSpec((rb, dout), lambda r: (r, 0))),
        compiler_params=pltpu.CompilerParams(
            dimension_semantics=("parallel",)),
    )(x2, w_t)
    return y.reshape(lead + (dout,))


def fused_attention_block(q_proj, kv_proj, residual, wo_t, gamma, beta,
                          num_heads, valid_lens=None):
    """LayerNorm(residual + W_o(MHA(q_proj, kv_proj, valid_lens)))."""
    B, Lq, d = q_proj.shape
    Lk = kv_proj.shape[1]
    dh = d // num_heads
    Bb = _batch_block(B, Lq)
    Kb = _kv_block(Lk)
    nk = Lk // Kb
    masked = valid_lens is not None

    in_specs = [
        pl.BlockSpec((Bb, Lq, d), lambda b, k: (b, 0, 0)),        # q (resident over k)
        pl.BlockSpec((Bb, Kb, 2 * d), lambda b, k: (b, k, 0)),    # kv (flash K axis)
        pl.BlockSpec((Bb, Lq, d), lambda b, k: (b, 0, 0)),        # residual
        pl.BlockSpec((d, d), lambda b, k: (0, 0)),                # W_o^T
        pl.BlockSpec((1, d), lambda b, k: (0, 0)),                # gamma
        pl.BlockSpec((1, d), lambda b, k: (0, 0)),                # beta
    ]
    args = [q_proj, kv_proj, residual, wo_t, gamma, beta]
    if masked:
        vl = jnp.broadcast_to(
            valid_lens.astype(jnp.int32).reshape(B, 1, 1), (B, Lq, 1))
        in_specs.append(pl.BlockSpec((Bb, Lq, 1), lambda b, k: (b, 0, 0)))
        args.append(vl)

    return pl.pallas_call(
        _make_attn_kernel(num_heads, dh, masked),
        out_shape=jax.ShapeDtypeStruct((B, Lq, d), q_proj.dtype),
        grid_spec=pltpu.PrefetchScalarGridSpec(
            num_scalar_prefetch=0,
            grid=(B // Bb, nk),
            in_specs=in_specs,
            out_specs=pl.BlockSpec((Bb, Lq, d), lambda b, k: (b, 0, 0)),
            scratch_shapes=[
                pltpu.VMEM((num_heads, Bb, Lq, 1), jnp.float32),   # m
                pltpu.VMEM((num_heads, Bb, Lq, 1), jnp.float32),   # l
                pltpu.VMEM((num_heads, Bb, Lq, dh), jnp.float32),  # acc
            ]),
        compiler_params=pltpu.CompilerParams(
            dimension_semantics=("parallel", "arbitrary")),
    )(*args)


def ffn_addnorm(z, w1_t, b1, w2_t, b2, gamma, beta):
    """LayerNorm(z + FFN(z)) fused in one kernel call."""
    shape = z.shape
    d = shape[-1]
    dh = w1_t.shape[1]
    z2 = z.reshape(-1, d)
    n = z2.shape[0]
    rb = _row_block(n)
    y = pl.pallas_call(
        _ffn_addnorm_kernel,
        out_shape=jax.ShapeDtypeStruct((n, d), z.dtype),
        grid_spec=pltpu.PrefetchScalarGridSpec(
            num_scalar_prefetch=0,
            grid=(n // rb,),
            in_specs=[pl.BlockSpec((rb, d), lambda r: (r, 0)),
                      pl.BlockSpec((d, dh), lambda r: (0, 0)),
                      pl.BlockSpec((1, dh), lambda r: (0, 0)),
                      pl.BlockSpec((dh, d), lambda r: (0, 0)),
                      pl.BlockSpec((1, d), lambda r: (0, 0)),
                      pl.BlockSpec((1, d), lambda r: (0, 0)),
                      pl.BlockSpec((1, d), lambda r: (0, 0))],
            out_specs=pl.BlockSpec((rb, d), lambda r: (r, 0))),
        compiler_params=pltpu.CompilerParams(
            dimension_semantics=("parallel",)),
    )(z2, w1_t, b1, w2_t, b2, gamma, beta)
    return y.reshape(shape)


# ---------------------------------------------------------------------------
# Parameter preparation (done once) + DecoderBlock forward
# ---------------------------------------------------------------------------
def prepare_decoder_params(params, num_heads, compute_dtype=None):
    """Fuse / transpose weights for the kernels.  W_q is pre-scaled by
    1/sqrt(Dh) (folds the score scaling into the projection for free).
    `compute_dtype=jnp.bfloat16` enables the bf16 MXU fast path."""
    cd = (lambda a: a.astype(compute_dtype)) if compute_dtype is not None else (lambda a: a)
    d = params["ln1_g"].shape[0]
    dh = params["ffn_b1"].shape[0]
    inv_sqrt = 1.0 / math.sqrt(d // num_heads)

    def prep_mha(p):
        wq = p["w_q"] * inv_sqrt
        return {
            "wqkv_t": cd(jnp.concatenate([wq, p["w_k"], p["w_v"]], axis=0).T),
            "wq_t": cd(wq.T),
            "wkv_t": cd(jnp.concatenate([p["w_k"], p["w_v"]], axis=0).T),
            "wo_t": cd(p["w_o"].T),
        }

    f32 = jnp.float32
    return {
        "attn1": prep_mha(params["attn1"]),
        "attn2": prep_mha(params["attn2"]),
        "ln1_g": params["ln1_g"].reshape(1, d).astype(f32),
        "ln1_b": params["ln1_b"].reshape(1, d).astype(f32),
        "ln2_g": params["ln2_g"].reshape(1, d).astype(f32),
        "ln2_b": params["ln2_b"].reshape(1, d).astype(f32),
        "ln3_g": params["ln3_g"].reshape(1, d).astype(f32),
        "ln3_b": params["ln3_b"].reshape(1, d).astype(f32),
        "ffn_w1_t": cd(params["ffn_w1"].T),
        "ffn_b1": params["ffn_b1"].reshape(1, dh).astype(f32),
        "ffn_w2_t": cd(params["ffn_w2"].T),
        "ffn_b2": params["ffn_b2"].reshape(1, d).astype(f32),
        "d": d,
    }


def decoder_block_forward(kp, X, state, block_i, num_heads):
    """Eval-mode forward of the d2l DecoderBlock (dropout == identity)."""
    enc_outputs, enc_valid_lens, caches = state
    cache = caches[block_i]
    key_values = X if cache is None else jnp.concatenate([cache, X], axis=1)
    new_caches = list(caches)
    new_caches[block_i] = key_values
    # TODO(synk): in-place KV-cache update via input_output_aliases for decode.

    d = kp["d"]
    a1 = kp["attn1"]
    if cache is None:
        q1, kv1 = qkv_projection(X, a1["wqkv_t"], d)       # fused, X read once
    else:
        q1 = matmul(X, a1["wq_t"])
        kv1 = matmul(key_values, a1["wkv_t"])
    Y = fused_attention_block(q1, kv1, X, a1["wo_t"],
                              kp["ln1_g"], kp["ln1_b"], num_heads, None)

    a2 = kp["attn2"]
    q2 = matmul(Y, a2["wq_t"])
    kv2 = matmul(enc_outputs, a2["wkv_t"])
    Z = fused_attention_block(q2, kv2, Y, a2["wo_t"],
                              kp["ln2_g"], kp["ln2_b"], num_heads,
                              enc_valid_lens)

    out = ffn_addnorm(Z, kp["ffn_w1_t"], kp["ffn_b1"],
                      kp["ffn_w2_t"], kp["ffn_b2"],
                      kp["ln3_g"], kp["ln3_b"])
    return out, (enc_outputs, enc_valid_lens, new_caches)


# ---------------------------------------------------------------------------
# Pure-JAX reference (mirrors the PyTorch module) for verification
# ---------------------------------------------------------------------------
def transpose_qkv(x, num_heads):
    b, l, d = x.shape
    x = x.reshape(b, l, num_heads, d // num_heads)
    x = jnp.transpose(x, (0, 2, 1, 3))
    return x.reshape(b * num_heads, l, d // num_heads)


def transpose_output(x, num_heads):
    bh, l, dh = x.shape
    b = bh // num_heads
    x = x.reshape(b, num_heads, l, dh)
    x = jnp.transpose(x, (0, 2, 1, 3))
    return x.reshape(b, l, num_heads * dh)


def _ref_linear(x, w, b=None):
    y = jnp.einsum("...i,oi->...o", x, w)
    return y if b is None else y + b


def _ref_mha(p, queries, keys, values, valid_lens, num_heads):
    q = transpose_qkv(_ref_linear(queries, p["w_q"]), num_heads)
    k = transpose_qkv(_ref_linear(keys, p["w_k"]), num_heads)
    v = transpose_qkv(_ref_linear(values, p["w_v"]), num_heads)
    scores = jnp.einsum("bqd,bkd->bqk", q, k) / math.sqrt(q.shape[-1])
    if valid_lens is not None:
        vl = jnp.repeat(valid_lens.astype(jnp.int32), num_heads, axis=0)
        col = jnp.arange(scores.shape[-1])[None, None, :]
        scores = jnp.where(col < vl[:, None, None], scores, -1e6)
    w_attn = jax.nn.softmax(scores, axis=-1)
    out = jnp.einsum("bqk,bkd->bqd", w_attn, v)
    return _ref_linear(transpose_output(out, num_heads), p["w_o"])


def _ref_addnorm(x, y, g, b, eps=1e-5):
    s = x + y
    mean = jnp.mean(s, axis=-1, keepdims=True)
    var = jnp.mean((s - mean) ** 2, axis=-1, keepdims=True)
    return (s - mean) / jnp.sqrt(var + eps) * g + b


def _ref_decoder_block(params, X, enc_outputs, enc_valid_lens, num_heads):
    key_values = X
    X2 = _ref_mha(params["attn1"], X, key_values, key_values, None, num_heads)
    Y = _ref_addnorm(X, X2, params["ln1_g"], params["ln1_b"])
    Y2 = _ref_mha(params["attn2"], Y, enc_outputs, enc_outputs,
                  enc_valid_lens, num_heads)
    Z = _ref_addnorm(Y, Y2, params["ln2_g"], params["ln2_b"])
    ffn_out = _ref_linear(jax.nn.relu(_ref_linear(Z, params["ffn_w1"],
                                                  params["ffn_b1"])),
                          params["ffn_w2"], params["ffn_b2"])
    return _ref_addnorm(Z, ffn_out, params["ln3_g"], params["ln3_b"])


# ---------------------------------------------------------------------------
# Parameters + test
# ---------------------------------------------------------------------------
def init_params(key, num_hiddens, ffn_num_hiddens):
    ks = jax.random.split(key, 12)
    w = lambda k, shape: 0.1 * jax.random.normal(k, shape, dtype=jnp.float32)

    def mha_params(k):
        k1, k2, k3, k4 = jax.random.split(k, 4)
        return {"w_q": w(k1, (num_hiddens, num_hiddens)),
                "w_k": w(k2, (num_hiddens, num_hiddens)),
                "w_v": w(k3, (num_hiddens, num_hiddens)),
                "w_o": w(k4, (num_hiddens, num_hiddens))}

    return {
        "attn1": mha_params(ks[0]),
        "attn2": mha_params(ks[1]),
        "ln1_g": 1.0 + 0.1 * jax.random.normal(ks[2], (num_hiddens,)),
        "ln1_b": 0.1 * jax.random.normal(ks[3], (num_hiddens,)),
        "ln2_g": 1.0 + 0.1 * jax.random.normal(ks[4], (num_hiddens,)),
        "ln2_b": 0.1 * jax.random.normal(ks[5], (num_hiddens,)),
        "ln3_g": 1.0 + 0.1 * jax.random.normal(ks[6], (num_hiddens,)),
        "ln3_b": 0.1 * jax.random.normal(ks[7], (num_hiddens,)),
        "ffn_w1": w(ks[8], (ffn_num_hiddens, num_hiddens)),
        "ffn_b1": 0.1 * jax.random.normal(ks[9], (ffn_num_hiddens,)),
        "ffn_w2": w(ks[10], (num_hiddens, ffn_num_hiddens)),
        "ffn_b2": 0.1 * jax.random.normal(ks[11], (num_hiddens,)),
    }


if __name__ == "__main__":
    key = jax.random.PRNGKey(0)
    B, L, num_hiddens, num_heads, ffn_num_hiddens = 2, 8, 32, 4, 64

    k_p, k_x, k_enc = jax.random.split(key, 3)
    params = init_params(k_p, num_hiddens, ffn_num_hiddens)
    X = jax.random.normal(k_x, (B, L, num_hiddens), dtype=jnp.float32)
    enc_outputs = jax.random.normal(k_enc, (B, L, num_hiddens),
                                    dtype=jnp.float32)
    enc_valid_lens = jnp.array([3, 6], dtype=jnp.int32)

    # f32 path (checked against the pure-JAX reference)
    kparams = prepare_decoder_params(params, num_heads)
    state = (enc_outputs, enc_valid_lens, [None])        # single block, i = 0
    out, new_state = decoder_block_forward(kparams, X, state, 0, num_heads)
    out = jax.block_until_ready(out)

    ref = _ref_decoder_block(params, X, enc_outputs, enc_valid_lens, num_heads)
    assert out.shape == (B, L, num_hiddens)
    assert bool(jnp.all(new_state[2][0] == X))           # KV-cache was updated
    max_err = float(jnp.max(jnp.abs(out - ref)))
    assert max_err < 2e-3, f"output mismatch: max abs err = {max_err}"

    # bf16 fast-path smoke test (bf16 into the MXU, f32 accumulation)
    kparams_bf16 = prepare_decoder_params(params, num_heads,
                                          compute_dtype=jnp.bfloat16)
    state_bf16 = (enc_outputs.astype(jnp.bfloat16), enc_valid_lens, [None])
    out_bf16, _ = decoder_block_forward(kparams_bf16, X.astype(jnp.bfloat16),
                                        state_bf16, 0, num_heads)
    out_bf16 = jax.block_until_ready(out_bf16)
    assert out_bf16.shape == (B, L, num_hiddens)
    assert bool(jnp.all(jnp.isfinite(out_bf16.astype(jnp.float32))))

    print("KERNEL_OK")
</pallas_src>

<mosaic_0001>
module attributes {stable_mosaic.version = 11 : i64} {
  func.func @_qkv_proj_kernel(%arg0: i32, %arg1: memref<8x32xf32, #tpu.memory_space<vmem>>, %arg2: memref<32x96xf32, #tpu.memory_space<vmem>>, %arg3: memref<8x32xf32, #tpu.memory_space<vmem>>, %arg4: memref<8x64xf32, #tpu.memory_space<vmem>>) attributes {dimension_semantics = [#tpu.dimension_semantics<parallel>], iteration_bounds = array<i64: 2>, scalar_prefetch = 0 : i64, scratch_operands = 0 : i64, tpu.core_type = #tpu.core_type<tc>, window_params = [{transform_indices = @transform_0, window_bounds = array<i64: 8, 32>}, {pipeline_mode = #tpu.pipeline_mode<synchronous>, transform_indices = @transform_1, window_bounds = array<i64: 32, 96>}, {transform_indices = @transform_2, window_bounds = array<i64: 8, 32>}, {transform_indices = @transform_3, window_bounds = array<i64: 8, 64>}]} {
    %c0 = arith.constant 0 : index
    %c0_0 = arith.constant 0 : index
    %0 = vector.load %arg1[%c0, %c0_0] : memref<8x32xf32, #tpu.memory_space<vmem>>, vector<8x32xf32>
    %c0_1 = arith.constant 0 : index
    %c0_2 = arith.constant 0 : index
    %1 = vector.load %arg2[%c0_1, %c0_2] : memref<32x96xf32, #tpu.memory_space<vmem>>, vector<32x96xf32>
    %cst = arith.constant dense<0.000000e+00> : vector<8x96xf32>
    %2 = tpu.matmul %0, %1, %cst {dimension_numbers = #tpu.dot_dimension_numbers<[1], [0], [0], [1], [0, 0, 1, 1], [], []>} : vector<8x32xf32>, vector<32x96xf32>, vector<8x96xf32> -> vector<8x96xf32>
    %3 = vector.extract_strided_slice %2 {offsets = [0, 0], sizes = [8, 32], strides = [1, 1]} : vector<8x96xf32> to vector<8x32xf32>
    %c0_3 = arith.constant 0 : index
    %c0_4 = arith.constant 0 : index
    %4 = vector.load %arg3[%c0_3, %c0_4] : memref<8x32xf32, #tpu.memory_space<vmem>>, vector<8x32xf32>
    tpu.vector_store %arg3[%c0_3, %c0_4], %3 {strides = array<i32>} : memref<8x32xf32, #tpu.memory_space<vmem>>, vector<8x32xf32>,
    %5 = vector.extract_strided_slice %2 {offsets = [0, 32], sizes = [8, 64], strides = [1, 1]} : vector<8x96xf32> to vector<8x64xf32>
    %c0_5 = arith.constant 0 : index
    %c0_6 = arith.constant 0 : index
    %6 = vector.load %arg4[%c0_5, %c0_6] : memref<8x64xf32, #tpu.memory_space<vmem>>, vector<8x64xf32>
    tpu.vector_store %arg4[%c0_5, %c0_6], %5 {strides = array<i32>} : memref<8x64xf32, #tpu.memory_space<vmem>>, vector<8x64xf32>,
    return
  }
  func.func @transform_0(%arg0: i32) -> (i32, i32) {
    %c0_i32 = arith.constant 0 : i32
    %c0_i32_0 = arith.constant 0 : i32
    return %arg0, %c0_i32 : i32, i32
  }
  func.func @transform_1(%arg0: i32) -> (i32, i32) {
    %c0_i32 = arith.constant 0 : i32
    %c0_i32_0 = arith.constant 0 : i32
    %c0_i32_1 = arith.constant 0 : i32
    return %c0_i32, %c0_i32_0 : i32, i32
  }
  func.func @transform_2(%arg0: i32) -> (i32, i32) {
    %c0_i32 = arith.constant 0 : i32
    %c0_i32_0 = arith.constant 0 : i32
    return %arg0, %c0_i32 : i32, i32
  }
  func.func @transform_3(%arg0: i32) -> (i32, i32) {
    %c0_i32 = arith.constant 0 : i32
    %c0_i32_0 = arith.constant 0 : i32
    return %arg0, %c0_i32 : i32, i32
  }
}

</mosaic_0001>

<bundles_post_ra>
// kernel: tpu_custom_call.1
= control target key start
LH: loop header
LB: loop body
LE: loop exit
PB: predicated region body
PF: predicated region fallthrough
CT: control target
= control target key end

     0   :  { %9 = vsyncpa [#allocation3], 0  ;;  %s826_s0 = inlined_call_operand.hbm [shape: f32[16,32], index: 0, kind: input, shape index: {}]   ;;  %s827_s1 = inlined_call_operand.hbm [shape: f32[32,96], index: 1, kind: input, shape index: {}]   ;;  %s828_s2 = inlined_call_operand.hbm [shape: f32[16,32], index: 2, kind: output, shape index: {0}]   ;;  %s829_s3 = inlined_call_operand.hbm [shape: f32[16,64], index: 3, kind: output, shape index: {1}]  }
   0x1   :  { %11 = vsyncpa [#allocation3 + $0x1], 0 }
   0x2   :  { %12 = vsyncpa [#allocation6], 0 }
   0x3   :  { %13 = vsyncpa [#allocation4], 0 }
   0x4   :  { %15 = vsyncpa [#allocation4 + $0x1], 0 }
   0x5   :  { %16 = vsyncpa [#allocation9], 0 }
   0x6   :  { %18 = vsyncpa [#allocation9 + $0x1], 0  ;;  %s671_s12 = smov 0   ;;  %s673_s13 = smov 0  }
   0x7   :  { %s675_s14 = smov 0   ;;  %s677_s15 = smov 0  }
   0x8 LB: > { %s139_s18 = sshll.u32 %s827_s1, 4  ;;  %s695_s19 = sadd.s32 4294967295, %s645_s15   ;;  %s645_s15 = sphi %s677_s15, %s839_s15   ;;  %s641_s14 = sphi %s675_s14, %s838_s14   ;;  %s637_s13 = sphi %s673_s13, %s837_s13   ;;  %s633_s12 = sphi %s671_s12, %s836_s12   ;;  %s140_s18 = int_to_ptr.hbm [resolvable:$true] %s139_s18 }
   0x9   : > { %p401_p0 = scmp.ge.s32.totalorder %s645_s15, 1  ;;  %p45_p1 = scmp.eq.s32.totalorder %s695_s19, 0 }
   0xa   : > { %p128_p2 = scmp.lt.s32.totalorder %s645_s15, 3  ;;  %s647_s21 = smov [#allocation5]  }
   0xb   : > { %s141_s22 = sshll.u32 %s647_s21, 4  ;;  %s648_s23 = smov 128   ;;  %s142_s22 = int_to_ptr.vmem [resolvable:$true] %s141_s22 }
   0xc   : > { %p700_p3 = pnand %p401_p0, %p128_p2  ;;  %s649_s24 = smov 8  }
   0xd   : > { %s400_s25 = sadd.s32 4294967294, %s645_s15   ;;  %s711_s26 = sadd.s32 1, %s645_s15  }
   0xe   : > { %p428_p4 = pneg %p700_p3  ;;  %s31_s27 = sadd.s32 1, %s641_s14 }
   0xf   : > { %s28_s28 = ssub.s32 %s645_s15, %s711_s26  ;;  %p38_p7 = scmp.ne.s32.totalorder %s641_s14, %s637_s13 }
  0x10   : > { %p429_p6 = pnand %p428_p4, %p45_p1  ;;  %p29_p8 = scmp.eq.s32.totalorder %s28_s28, 0 }
  0x11   : > { %p39_p9 = scmp.eq.s32.totalorder %s645_s15, 0  ;;  %p44_p10 = scmp.ne.s32.totalorder %s637_s13, %s633_s12 }
  0x12   : > { %431 = dma.hbm_to_vmem [thread:$0]  (!%p429_p6), %s140_s18, 512, %s142_s22, [#allocation6], %s648_s23, %s648_s23, %s649_s24  }
  0x13   : > { %p89_p11 = scmp.eq.s32.totalorder %s695_s19, 1  ;;  %p727_p12 = por %p45_p1, %p44_p10 }
  0x14   : > { %s723_s29 = scalar_select %p29_p8, %s641_s14, %s31_s27  }
  0x15   : > { %p731_p13 = por %p89_p11, %p38_p7  ;;  %p95_p0 = scmp.eq.s32.totalorder %s400_s25, 1 }
  0x16   : > { %p40_p2 = por %p39_p9, %p38_p7  ;;  %s155_s5 = sand.u32 1, %s641_s14  }
  0x17   : > { %p736_p4 = por %p95_p0, %p44_p10  ;;  %p444_p6 = scmp.lt.s32.totalorder %s645_s15, 2 }
  0x18   : > { %s404_s7 = sshll.u32 %s155_s5, 3  ;;  %s405_s8 = sshll.u32 %s645_s15, 3 }
  0x19   : > { %s163_s11 = scalar_lea.hbm %s826_s0, %s405_s8  ;;  %s159_s17 = scalar_lea.vmem [#allocation2], %s404_s7 }
  0x1a   : > { %s165_s16 = sshll.u32 %s163_s11, 4  ;;  %s167_s18 = sshll.u32 %s159_s17, 4  ;;  %s166_s16 = int_to_ptr.hbm [resolvable:$true] %s165_s16  ;;  %s168_s18 = int_to_ptr.vmem [resolvable:$true] %s167_s18 }
  0x1b   : > { %p745_p8 = pnand %p444_p6, %p40_p2  ;;  %s156_s22 = scalar_lea.sflag [#allocation3], %s155_s5 }
  0x1c   : > { %s513_s23 = sshra.s32 %s166_s16, 4  ;;  %s520_s28 = scalar_lea.hbm %s826_s0, 16  ;;  %s514_s23 = int_to_ptr.hbm [resolvable:$true] %s513_s23 }
  0x1d   : > { %s515_s24 = scalar_lea.hbm %s514_s23, 8  ;;  %p517_p9 = pneg %p745_p8 }
  0x1e   : > { %p516_p7 = scmp.ne.s32.totalorder %s514_s23, %s515_s24  ;;  %p521_p0 = scmp.lt.s32.totalorder %s514_s23, %s826_s0 }
  0x1f   : > { %p522_p2 = scmp.lt.s32.totalorder %s520_s28, %s515_s24 }
  0x20   : > { %p518_p10 = pnand %p517_p9, %p516_p7 }
  0x21   : > { %p523_p6 = por %p522_p2, %p521_p0 }
  0x22   : > { %p519_p11 = pneg %p518_p10 }
  0x24   : > { %p524_p5 = pnand %p523_p6, %p519_p11 }
  0x26   : > { %527 = shalt.err (!%p524_p5)
}
  0x27   : > { %435 = dma.hbm_to_vmem [thread:$0]  (!%p745_p8), %s166_s16, 128, %s168_s18, %s156_s22  }
  0x28   : > { %176 = sbr.rel (%p700_p3) target bundleno = 300 (0x12c), region = 28  ;;  %s762_s5 = sand.u32 (!%p700_p3), 1, %s637_s13  }
  0x29   : > { %s765_s9 = sshll.u32 (!%p700_p3), %s762_s5, 3  ;;  %s179_s10 = scalar_lea.sflag (!%p700_p3), [#allocation3], %s762_s5 }
  0x2a   : > { %s182_s11 = scalar_lea.vmem (!%p700_p3), [#allocation2], %s765_s9 }
  0x2d   : > { %616 = dma.done.wait (%p727_p12), %s179_s10, 128  }
  0x2e   : > { %618 = vsyncadd (%p727_p12), %s179_s10, 4294967168 }
  0x2f   : > { %620 = dma.done.wait (%p45_p1), [#allocation6], 512  }
  0x30   : > { %622 = vsyncadd (%p45_p1), [#allocation6], 4294966784  ;;  %v220_v0 = vld [vmem:[#allocation5 + $0x18] sm:$0xff]  ;;  %v219_v1 = vld [vmem:[#allocation5 + $0x10] sm:$0xff]  ;;  %vm221_vm0 = vcmask 261120   ;;  %s414_s20 = sshll.u32 %s695_s19, 3 }
  0x31   : > { %237 = vmatpush.msra.mxu0 %v220_v0  ;;  %v218_v2 = vld [vmem:[#allocation5 + $0x8] sm:$0xff]  ;;  %v217_v3 = vld [vmem:[#allocation5] sm:$0xff]  ;;  %v216_v4 = vld [vmem:[%s182_s11] sm:$0xff]  ;;  %s268_s17 = scalar_lea.hbm %s828_s2, %s414_s20  ;;  %s208_s18 = scalar_lea.vmem [#allocation7], %s765_s9 }
  0x32   : > { %s270_s21 = sshll.u32 %s208_s18, 4  ;;  %s272_s22 = sshll.u32 %s268_s17, 4  ;;  %s271_s21 = int_to_ptr.vmem [resolvable:$true] %s270_s21  ;;  %s273_s22 = int_to_ptr.hbm [resolvable:$true] %s272_s22 }
  0x33   : > { %238 = vmatpush.msra.mxu0 %v219_v1  ;;  %s650_s23 = smov 96   ;;  %s253_s24 = scalar_lea.sflag [#allocation4], %s762_s5 }
  0x34   : > { %s557_s25 = sshra.s32 %s273_s22, 4  ;;  %s563_s7 = scalar_lea.hbm %s828_s2, 16  ;;  %s558_s25 = int_to_ptr.hbm [resolvable:$true] %s557_s25 }
  0x35   : > { %239 = vmatpush.msra.mxu0 %v218_v2  ;;  %s559_s27 = scalar_lea.hbm %s558_s25, 8  ;;  %p564_p12 = scmp.lt.s32.totalorder %s558_s25, %s828_s2 }
  0x36   : > { %p560_p1 = scmp.ne.s32.totalorder %s558_s25, %s559_s27  ;;  %p565_p8 = scmp.lt.s32.totalorder %s563_s7, %s559_s27 }
  0x37   : > { %240 = vmatpush.msra.mxu0 %v217_v3 }
  0x38   : > { %411 = vmatmul.msk.f32.vlgmr.msra.gmra.mxu0 %vm221_vm0, %v216_v4  ;;  %p561_p3 = pnand %p560_p1, %p731_p13  ;;  %p566_p7 = por %p565_p8, %p564_p12 }
  0x3a   : > { %p562_p5 = pneg %p561_p3 }
  0x3c   : > { %p567_p9 = pnand %p566_p7, %p562_p5 }
  0xb5   : > { %v242_v5 = vpop.f32.mrf.mxu0 }
  0xb6   : > { %245 = vst.msk [vmem:[%s208_s18] sm:$0xff] %vm221_vm0, %v242_v5  ;;  %247 = vrot.lane.b32.xlu0 %v242_v5, %s650_s23 }
  0xb7   : > { %570 = shalt.err (!%p567_p9)
}
  0xb8   : > { %424 = dma.vmem_to_hbm [thread:$0]  (%p731_p13), %s271_s21, 128, %s273_s22, %s253_s24   ;;  %vm250_vm1 = vcmask 523264  }
  0xb9   : > { %s282_s16 = scalar_lea.hbm %s829_s3, %s414_s20  ;;  %s215_s17 = scalar_lea.vmem [#allocation8], %s765_s9 }
  0xba   : > { %s284_s18 = sshll.u32 %s215_s17, 4  ;;  %s286_s23 = sshll.u32 %s282_s16, 4  ;;  %s285_s18 = int_to_ptr.vmem [resolvable:$true] %s284_s18  ;;  %s287_s23 = int_to_ptr.hbm [resolvable:$true] %s286_s23 }
  0xbb   : > { %s258_s25 = scalar_lea.sflag [#allocation9], %s762_s5  ;;  %s585_s27 = sshra.s32 %s287_s23, 4  ;;  %s586_s27 = int_to_ptr.hbm [resolvable:$true] %s585_s27 }
  0xbc   : > { %s587_s19 = scalar_lea.hbm %s586_s27, 8  ;;  %s591_s20 = scalar_lea.hbm %s829_s3, 16 }
  0xbd   : > { %p588_p10 = scmp.ne.s32.totalorder %s586_s27, %s587_s19  ;;  %p592_p2 = scmp.lt.s32.totalorder %s586_s27, %s829_s3 }
  0xbe   : > { %p593_p6 = scmp.lt.s32.totalorder %s591_s20, %s587_s19 }
  0xbf   : > { %p589_p11 = pnand %p588_p10, %p731_p13 }
  0xc0   : > { %p594_p1 = por %p593_p6, %p592_p2 }
  0xc1   : > { %p590_p0 = pneg %p589_p11 }
  0xc3   : > { %p595_p3 = pnand %p594_p1, %p590_p0 }
 0x128   : > { %v248_v6 = vpop.permute.xlu0 %247 }
 0x129   : > { %251 = vst.msk [vmem:[%s215_s17] sm:$0xff] %vm250_vm1, %v248_v6 }
 0x12a   : > { %598 = shalt.err (!%p595_p3)
}
 0x12b   : > { %425 = dma.vmem_to_hbm [thread:$0]  (%p731_p13), %s285_s18, 128, %s287_s23, %s258_s25  }
 0x12c PF: > { %s298_s5 = sand.u32 1, %s633_s12   ;;  %p835_p5 = scmp.ge.s32.totalorder %s645_s15, 2 }
 0x12d   : > { %s299_s28 = scalar_lea.sflag [#allocation4], %s298_s5 }
 0x12e   : > { %p437_p12 = pnand %p835_p5, %p736_p4 }
 0x130   : > { %p438_p8 = pneg %p437_p12 }
 0x132   : > { %624 = dma.done.wait (%p438_p8), %s299_s28, 128  }
 0x133   : > { %626 = vsyncadd (%p438_p8), %s299_s28, 4294967168  ;;  %s309_s7 = scalar_lea.sflag [#allocation9], %s298_s5 }
 0x134   : > { %628 = dma.done.wait (%p438_p8), %s309_s7, 128  }
 0x135   : > { %630 = vsyncadd (%p438_p8), %s309_s7, 4294967168  ;;  %p21_p13 = scmp.ge.s32.totalorder %s711_s26, 4   ;;  %s836_s12 = smov %s637_s13 }
 0x136   : > { %s837_s13 = smov %s641_s14  ;;  %s838_s14 = smov %s723_s29 }
 0x137   : > { %s839_s15 = smov %s711_s26  ;;  %23 = sbr.rel (!%p21_p13) target bundleno = 8 (0x8), region = 94 }
 0x13c   :  { %315 = vsyncpa [#allocation3], 1 }
 0x13d   :  { %317 = vsyncpa [#allocation3 + $0x1], 1 }
 0x13e   :  { %318 = vsyncpa [#allocation6], 1 }
 0x13f   :  { %319 = vsyncpa [#allocation4], 1 }
 0x140   :  { %321 = vsyncpa [#allocation4 + $0x1], 1 }
 0x141   :  { %322 = vsyncpa [#allocation9], 1 }
 0x142   :  { %324 = vsyncpa [#allocation9 + $0x1], 1 }

</bundles_post_ra>
